<compile_context>
chip_gen: v6e
topology: v6e:2x2x1
jax: 0.10.0
libtpu: 0.0.40
codegen_flags: <defaults>
</compile_context>

<pallas_src>
import math

import jax
import jax.numpy as jnp
from jax.experimental import pallas as pl
from jax.experimental.pallas import tpu as pltpu


def _freq_filter_kernel(x_ref, cak_ref, sak_ref, kfwd_ref, kinv_ref,
                        wr_ref, wi_ref, o_ref):
    # x_ref : (1, M, b*C)     M = Bblk*a rows of one batch-block
    # cak   : (M, M)          kron(I_Bblk, cos DFT_a)
    # sak   : (M, M)          kron(I_Bblk, sin DFT_a)
    # kfwd  : (b*C, 2*bh*C)   [kron(cos_b, I_C) | kron(-sin_b, I_C)]
    # kinv  : (2*bh*C, b*C)   [kron(cbi, I_C) ; -kron(sbi, I_C)]  (1/(a*b) and
    #                         Hermitian duplication weights folded in)
    # wr/wi : (M, bh*C)       real / imag of combined complex weight
    H = wr_ref.shape[-1]                       # bh*C (a multiple of 128 here)
    dot = lambda p, q: jnp.dot(p, q, preferred_element_type=jnp.float32)

    x = x_ref[0]                               # (M, b*C)
    cak = cak_ref[...]
    sak = sak_ref[...]

    # ---- forward rfft along b: real & imag parts in ONE matmul ----
    t = dot(x, kfwd_ref[...])                  # (M, 2H) = [tr | ti]
    # ---- full (unnormalized) DFT along a, applied once to the packed slab ----
    ct = dot(cak, t)                           # [ca@tr | ca@ti]
    st = dot(sak, t)                           # [sa@tr | sa@ti]
    xr = ct[:, :H] + st[:, H:]
    xi = ct[:, H:] - st[:, :H]

    # ---- elementwise complex filter: X * (beta*Wl + (1-beta)*Wh) ----
    wr = wr_ref[...]
    wi = wi_ref[...]
    y = jnp.concatenate([xr * wr - xi * wi, xr * wi + xi * wr], axis=1)  # (M, 2H)

    # ---- inverse DFT along a on the packed slab ----
    cy = dot(cak, y)
    sy = dot(sak, y)
    zr = cy[:, :H] - sy[:, H:]
    zi = cy[:, H:] + sy[:, :H]

    # ---- inverse rfft along b (real part), single matmul ----
    z = jnp.concatenate([zr, zi], axis=1)      # (M, 2H)
    o_ref[0] = dot(z, kinv_ref[...]).astype(o_ref.dtype)


def frequency_split_filter(x, low_weight, high_weight, beta,
                           spatial_size=None, batch_block=None):
    """x: (B, N, C); low/high_weight: (a, bh, C, 2); beta scalar -> (B, N, C) f32."""
    B, N, C = x.shape
    if spatial_size is None:
        a = b = int(math.sqrt(N))
        if a * b != N:
            raise ValueError(f"N={N} is not a perfect square; pass spatial_size")
    else:
        a, b = spatial_size
    bh = b // 2 + 1
    bC = b * C
    H = bh * C
    f32 = jnp.float32

    # ---- batch blocking: pack Bblk batches into the matmul M dimension ----
    if batch_block is None:
        bblk = max(1, 128 // a)                 # fill ~128 MXU rows
        if B >= 2:                               # keep >= 2 grid steps so both
            bblk = min(bblk, (B + 1) // 2)       # v7x TensorCores get work
        bblk = max(1, min(bblk, B))
    else:
        bblk = max(1, min(batch_block, B))
    nblk = (B + bblk - 1) // bblk
    Bp = nblk * bblk
    M = bblk * a

    # ---- combine low/high weights once: X*(beta*Wl + (1-beta)*Wh) ----
    wc = beta * low_weight.astype(f32) + (1.0 - beta) * high_weight.astype(f32)
    wr = jnp.tile(wc[..., 0].reshape(a, H), (bblk, 1))        # (M, H)
    wi = jnp.tile(wc[..., 1].reshape(a, H), (bblk, 1))        # (M, H)

    # ---- DFT matrices (angles reduced mod period for f32 accuracy) ----
    ia = jnp.arange(a, dtype=jnp.int32)
    ib = jnp.arange(b, dtype=jnp.int32)
    ik = jnp.arange(bh, dtype=jnp.int32)
    ang_a = (2.0 * jnp.pi / a) * ((ia[:, None] * ia[None, :]) % a).astype(f32)
    ca = jnp.cos(ang_a)                          # (a, a)
    sa = jnp.sin(ang_a)
    eye_bb = jnp.eye(bblk, dtype=f32)
    cak = jnp.kron(eye_bb, ca)                   # (M, M)  block-diag per batch
    sak = jnp.kron(eye_bb, sa)

    ang_b = (2.0 * jnp.pi / b) * ((ib[:, None] * ik[None, :]) % b).astype(f32)
    cb = jnp.cos(ang_b)                          # (b, bh)
    nsb = -jnp.sin(ang_b)                        # forward-sign folded in
    # inverse rfft matrices with Hermitian duplication weights and 1/(a*b)
    cvec = jnp.full((bh,), 2.0, dtype=f32).at[0].set(1.0)
    if b % 2 == 0:
        cvec = cvec.at[b // 2].set(1.0)
    ang_bi = (2.0 * jnp.pi / b) * ((ik[:, None] * ib[None, :]) % b).astype(f32)
    scale = 1.0 / float(a * b)
    cbi = cvec[:, None] * jnp.cos(ang_bi) * scale   # (bh, b)
    sbi = cvec[:, None] * jnp.sin(ang_bi) * scale

    # block-diagonal (per-channel) versions, re/im fused into single matrices
    eye_c = jnp.eye(C, dtype=f32)
    kfwd = jnp.concatenate([jnp.kron(cb, eye_c), jnp.kron(nsb, eye_c)], axis=1)    # (bC, 2H)
    kinv = jnp.concatenate([jnp.kron(cbi, eye_c), -jnp.kron(sbi, eye_c)], axis=0)  # (2H, bC)

    # ---- free reshape to lane-dense blocks; pad batch to multiple of bblk ----
    x_flat = x.reshape(B, a, bC).astype(f32)
    if Bp != B:
        x_flat = jnp.pad(x_flat, ((0, Bp - B), (0, 0), (0, 0)))
    x_blk = x_flat.reshape(nblk, M, bC)

    # advisory cost estimate: 6 matmuls per grid step
    flops = nblk * (4 * M * bC * (2 * H) + 8 * M * M * (2 * H))
    bytes_accessed = 4 * (2 * Bp * a * bC + 2 * M * M + 2 * bC * 2 * H + 2 * M * H)

    out_blk = pl.pallas_call(
        _freq_filter_kernel,
        out_shape=jax.ShapeDtypeStruct((nblk, M, bC), f32),
        grid_spec=pltpu.PrefetchScalarGridSpec(
            num_scalar_prefetch=0,
            grid=(nblk,),
            in_specs=[
                pl.BlockSpec((1, M, bC), lambda i: (i, 0, 0)),      # x block
                pl.BlockSpec((M, M), lambda i: (0, 0)),             # cak (resident)
                pl.BlockSpec((M, M), lambda i: (0, 0)),             # sak (resident)
                pl.BlockSpec((bC, 2 * H), lambda i: (0, 0)),        # kfwd (resident)
                pl.BlockSpec((2 * H, bC), lambda i: (0, 0)),        # kinv (resident)
                pl.BlockSpec((M, H), lambda i: (0, 0)),             # wr (resident)
                pl.BlockSpec((M, H), lambda i: (0, 0)),             # wi (resident)
            ],
            out_specs=pl.BlockSpec((1, M, bC), lambda i: (i, 0, 0)),
        ),
        compiler_params=pltpu.CompilerParams(
            dimension_semantics=("parallel",)),
        cost_estimate=pl.CostEstimate(flops=int(flops), transcendentals=0,
                                      bytes_accessed=int(bytes_accessed)),
    )(x_blk, cak, sak, kfwd, kinv, wr, wi)

    # ---- free reshape back to (B, N, C), dropping batch padding ----
    return out_blk.reshape(Bp, a, bC)[:B].reshape(B, N, C)


if __name__ == "__main__":
    key = jax.random.PRNGKey(0)
    B, dim, h, w = 2, 16, 14, 8          # module defaults h=14, w=8 => a=b=14
    a = b = 14
    N = a * b

    k1, k2, k3 = jax.random.split(key, 3)
    x = jax.random.normal(k1, (B, N, dim), dtype=jnp.float32)
    low_weight = 0.02 * jax.random.normal(k2, (h, w, dim, 2), dtype=jnp.float32)
    high_weight = 0.02 * jax.random.normal(k3, (h, w, dim, 2), dtype=jnp.float32)
    beta = jnp.float32(0.5)

    out = frequency_split_filter(x, low_weight, high_weight, beta)
    out = jax.block_until_ready(out)
    assert out.shape == (B, N, dim) and out.dtype == jnp.float32

    # pure-JAX reference mirroring the PyTorch forward exactly
    xs = x.reshape(B, a, b, dim).astype(jnp.float32)
    xf = jnp.fft.rfft2(xs, axes=(1, 2), norm="ortho")
    lw = low_weight[..., 0] + 1j * low_weight[..., 1]
    hw = high_weight[..., 0] + 1j * high_weight[..., 1]
    comb = beta * (xf * lw) + (1.0 - beta) * (xf * hw)
    ref = jnp.fft.irfft2(comb, s=(a, b), axes=(1, 2), norm="ortho").reshape(B, N, dim)

    err = float(jnp.max(jnp.abs(out - ref)))
    if not jnp.allclose(out, ref, atol=2e-4, rtol=1e-3):
        raise AssertionError(f"mismatch vs reference, max abs err = {err}")
    print("KERNEL_OK")
</pallas_src>

<mosaic_0001>
module attributes {stable_mosaic.version = 11 : i64} {
  func.func @_freq_filter_kernel(%arg0: i32, %arg1: memref<1x14x224xf32, #tpu.memory_space<vmem>>, %arg2: memref<14x14xf32, #tpu.memory_space<vmem>>, %arg3: memref<14x14xf32, #tpu.memory_space<vmem>>, %arg4: memref<224x256xf32, #tpu.memory_space<vmem>>, %arg5: memref<256x224xf32, #tpu.memory_space<vmem>>, %arg6: memref<14x128xf32, #tpu.memory_space<vmem>>, %arg7: memref<14x128xf32, #tpu.memory_space<vmem>>, %arg8: memref<1x14x224xf32, #tpu.memory_space<vmem>>) attributes {dimension_semantics = [#tpu.dimension_semantics<parallel>], iteration_bounds = array<i64: 2>, scalar_prefetch = 0 : i64, scratch_operands = 0 : i64, tpu.core_type = #tpu.core_type<tc>, window_params = [{transform_indices = @transform_0, window_bounds = array<i64: 1, 14, 224>}, {pipeline_mode = #tpu.pipeline_mode<synchronous>, transform_indices = @transform_1, window_bounds = array<i64: 14, 14>}, {pipeline_mode = #tpu.pipeline_mode<synchronous>, transform_indices = @transform_2, window_bounds = array<i64: 14, 14>}, {pipeline_mode = #tpu.pipeline_mode<synchronous>, transform_indices = @transform_3, window_bounds = array<i64: 224, 256>}, {pipeline_mode = #tpu.pipeline_mode<synchronous>, transform_indices = @transform_4, window_bounds = array<i64: 256, 224>}, {pipeline_mode = #tpu.pipeline_mode<synchronous>, transform_indices = @transform_5, window_bounds = array<i64: 14, 128>}, {pipeline_mode = #tpu.pipeline_mode<synchronous>, transform_indices = @transform_6, window_bounds = array<i64: 14, 128>}, {transform_indices = @transform_7, window_bounds = array<i64: 1, 14, 224>}]} {
    %c0 = arith.constant 0 : index
    %c0_0 = arith.constant 0 : index
    %c0_1 = arith.constant 0 : index
    %0 = vector.load %arg1[%c0, %c0_0, %c0_1] : memref<1x14x224xf32, #tpu.memory_space<vmem>>, vector<1x14x224xf32>
    %1 = vector.shape_cast %0 : vector<1x14x224xf32> to vector<14x224xf32>
    %c0_2 = arith.constant 0 : index
    %c0_3 = arith.constant 0 : index
    %2 = vector.load %arg2[%c0_2, %c0_3] : memref<14x14xf32, #tpu.memory_space<vmem>>, vector<14x14xf32>
    %c0_4 = arith.constant 0 : index
    %c0_5 = arith.constant 0 : index
    %3 = vector.load %arg3[%c0_4, %c0_5] : memref<14x14xf32, #tpu.memory_space<vmem>>, vector<14x14xf32>
    %c0_6 = arith.constant 0 : index
    %c0_7 = arith.constant 0 : index
    %4 = vector.load %arg4[%c0_6, %c0_7] : memref<224x256xf32, #tpu.memory_space<vmem>>, vector<224x256xf32>
    %cst = arith.constant dense<0.000000e+00> : vector<14x256xf32>
    %5 = tpu.matmul %1, %4, %cst {dimension_numbers = #tpu.dot_dimension_numbers<[1], [0], [0], [1], [0, 0, 1, 1], [], []>} : vector<14x224xf32>, vector<224x256xf32>, vector<14x256xf32> -> vector<14x256xf32>
    %cst_8 = arith.constant dense<0.000000e+00> : vector<14x256xf32>
    %6 = tpu.matmul %2, %5, %cst_8 {dimension_numbers = #tpu.dot_dimension_numbers<[1], [0], [0], [1], [0, 0, 1, 1], [], []>} : vector<14x14xf32>, vector<14x256xf32>, vector<14x256xf32> -> vector<14x256xf32>
    %cst_9 = arith.constant dense<0.000000e+00> : vector<14x256xf32>
    %7 = tpu.matmul %3, %5, %cst_9 {dimension_numbers = #tpu.dot_dimension_numbers<[1], [0], [0], [1], [0, 0, 1, 1], [], []>} : vector<14x14xf32>, vector<14x256xf32>, vector<14x256xf32> -> vector<14x256xf32>
    %8 = vector.extract_strided_slice %6 {offsets = [0, 0], sizes = [14, 128], strides = [1, 1]} : vector<14x256xf32> to vector<14x128xf32>
    %9 = vector.extract_strided_slice %7 {offsets = [0, 128], sizes = [14, 128], strides = [1, 1]} : vector<14x256xf32> to vector<14x128xf32>
    %10 = arith.addf %8, %9 : vector<14x128xf32>
    %11 = vector.extract_strided_slice %6 {offsets = [0, 128], sizes = [14, 128], strides = [1, 1]} : vector<14x256xf32> to vector<14x128xf32>
    %12 = vector.extract_strided_slice %7 {offsets = [0, 0], sizes = [14, 128], strides = [1, 1]} : vector<14x256xf32> to vector<14x128xf32>
    %13 = arith.subf %11, %12 : vector<14x128xf32>
    %c0_10 = arith.constant 0 : index
    %c0_11 = arith.constant 0 : index
    %14 = vector.load %arg6[%c0_10, %c0_11] : memref<14x128xf32, #tpu.memory_space<vmem>>, vector<14x128xf32>
    %c0_12 = arith.constant 0 : index
    %c0_13 = arith.constant 0 : index
    %15 = vector.load %arg7[%c0_12, %c0_13] : memref<14x128xf32, #tpu.memory_space<vmem>>, vector<14x128xf32>
    %16 = arith.mulf %10, %14 : vector<14x128xf32>
    %17 = arith.mulf %13, %15 : vector<14x128xf32>
    %18 = arith.subf %16, %17 : vector<14x128xf32>
    %19 = arith.mulf %10, %15 : vector<14x128xf32>
    %20 = arith.mulf %13, %14 : vector<14x128xf32>
    %21 = arith.addf %19, %20 : vector<14x128xf32>
    %22 = tpu.concatenate %18, %21 in 1 : vector<14x128xf32>, vector<14x128xf32> -> vector<14x256xf32>
    %cst_14 = arith.constant dense<0.000000e+00> : vector<14x256xf32>
    %23 = tpu.matmul %2, %22, %cst_14 {dimension_numbers = #tpu.dot_dimension_numbers<[1], [0], [0], [1], [0, 0, 1, 1], [], []>} : vector<14x14xf32>, vector<14x256xf32>, vector<14x256xf32> -> vector<14x256xf32>
    %cst_15 = arith.constant dense<0.000000e+00> : vector<14x256xf32>
    %24 = tpu.matmul %3, %22, %cst_15 {dimension_numbers = #tpu.dot_dimension_numbers<[1], [0], [0], [1], [0, 0, 1, 1], [], []>} : vector<14x14xf32>, vector<14x256xf32>, vector<14x256xf32> -> vector<14x256xf32>
    %25 = vector.extract_strided_slice %23 {offsets = [0, 0], sizes = [14, 128], strides = [1, 1]} : vector<14x256xf32> to vector<14x128xf32>
    %26 = vector.extract_strided_slice %24 {offsets = [0, 128], sizes = [14, 128], strides = [1, 1]} : vector<14x256xf32> to vector<14x128xf32>
    %27 = arith.subf %25, %26 : vector<14x128xf32>
    %28 = vector.extract_strided_slice %23 {offsets = [0, 128], sizes = [14, 128], strides = [1, 1]} : vector<14x256xf32> to vector<14x128xf32>
    %29 = vector.extract_strided_slice %24 {offsets = [0, 0], sizes = [14, 128], strides = [1, 1]} : vector<14x256xf32> to vector<14x128xf32>
    %30 = arith.addf %28, %29 : vector<14x128xf32>
    %31 = tpu.concatenate %27, %30 in 1 : vector<14x128xf32>, vector<14x128xf32> -> vector<14x256xf32>
    %c0_16 = arith.constant 0 : index
    %c0_17 = arith.constant 0 : index
    %32 = vector.load %arg5[%c0_16, %c0_17] : memref<256x224xf32, #tpu.memory_space<vmem>>, vector<256x224xf32>
    %cst_18 = arith.constant dense<0.000000e+00> : vector<14x224xf32>
    %33 = tpu.matmul %31, %32, %cst_18 {dimension_numbers = #tpu.dot_dimension_numbers<[1], [0], [0], [1], [0, 0, 1, 1], [], []>} : vector<14x256xf32>, vector<256x224xf32>, vector<14x224xf32> -> vector<14x224xf32>
    %c0_19 = arith.constant 0 : index
    %c0_20 = arith.constant 0 : index
    %c0_21 = arith.constant 0 : index
    %34 = vector.load %arg8[%c0_19, %c0_20, %c0_21] : memref<1x14x224xf32, #tpu.memory_space<vmem>>, vector<1x14x224xf32>
    %35 = vector.shape_cast %34 : vector<1x14x224xf32> to vector<14x224xf32>
    %36 = vector.shape_cast %33 : vector<14x224xf32> to vector<1x14x224xf32>
    tpu.vector_store %arg8[%c0_19, %c0_20, %c0_21], %36 {strides = array<i32>} : memref<1x14x224xf32, #tpu.memory_space<vmem>>, vector<1x14x224xf32>,
    return
  }
  func.func @transform_0(%arg0: i32) -> (i32, i32, i32) {
    %c0_i32 = arith.constant 0 : i32
    %c0_i32_0 = arith.constant 0 : i32
    %c0_i32_1 = arith.constant 0 : i32
    return %arg0, %c0_i32, %c0_i32_0 : i32, i32, i32
  }
  func.func @transform_1(%arg0: i32) -> (i32, i32) {
    %c0_i32 = arith.constant 0 : i32
    %c0_i32_0 = arith.constant 0 : i32
    %c0_i32_1 = arith.constant 0 : i32
    return %c0_i32, %c0_i32_0 : i32, i32
  }
  func.func @transform_2(%arg0: i32) -> (i32, i32) {
    %c0_i32 = arith.constant 0 : i32
    %c0_i32_0 = arith.constant 0 : i32
    %c0_i32_1 = arith.constant 0 : i32
    return %c0_i32, %c0_i32_0 : i32, i32
  }
  func.func @transform_3(%arg0: i32) -> (i32, i32) {
    %c0_i32 = arith.constant 0 : i32
    %c0_i32_0 = arith.constant 0 : i32
    %c0_i32_1 = arith.constant 0 : i32
    return %c0_i32, %c0_i32_0 : i32, i32
  }
  func.func @transform_4(%arg0: i32) -> (i32, i32) {
    %c0_i32 = arith.constant 0 : i32
    %c0_i32_0 = arith.constant 0 : i32
    %c0_i32_1 = arith.constant 0 : i32
    return %c0_i32, %c0_i32_0 : i32, i32
  }
  func.func @transform_5(%arg0: i32) -> (i32, i32) {
    %c0_i32 = arith.constant 0 : i32
    %c0_i32_0 = arith.constant 0 : i32
    %c0_i32_1 = arith.constant 0 : i32
    return %c0_i32, %c0_i32_0 : i32, i32
  }
  func.func @transform_6(%arg0: i32) -> (i32, i32) {
    %c0_i32 = arith.constant 0 : i32
    %c0_i32_0 = arith.constant 0 : i32
    %c0_i32_1 = arith.constant 0 : i32
    return %c0_i32, %c0_i32_0 : i32, i32
  }
  func.func @transform_7(%arg0: i32) -> (i32, i32, i32) {
    %c0_i32 = arith.constant 0 : i32
    %c0_i32_0 = arith.constant 0 : i32
    %c0_i32_1 = arith.constant 0 : i32
    return %arg0, %c0_i32, %c0_i32_0 : i32, i32, i32
  }
}

</mosaic_0001>

<bundles_post_ra>
// kernel: tpu_custom_call.1
= control target key start
LH: loop header
LB: loop body
LE: loop exit
PB: predicated region body
PF: predicated region fallthrough
CT: control target
= control target key end

     0   :  { %s1075_s24 = smov 0   ;;  %s1516_s0 = inlined_call_operand.vmem [shape: f32[2,14,224], index: 0, kind: input, shape index: {}]   ;;  %s1517_s1 = inlined_call_operand.vmem [shape: f32[14,14], index: 1, kind: input, shape index: {}]   ;;  %s1518_s2 = inlined_call_operand.vmem [shape: f32[14,14], index: 2, kind: input, shape index: {}]   ;;  %s1519_s3 = inlined_call_operand.vmem [shape: f32[224,256], index: 3, kind: input, shape index: {}]   ;;  %s1520_s4 = inlined_call_operand.vmem [shape: f32[256,224], index: 4, kind: input, shape index: {}]   ;;  %s1521_s5 = inlined_call_operand.vmem [shape: f32[14,128], index: 5, kind: input, shape index: {}]   ;;  %s1522_s6 = inlined_call_operand.vmem [shape: f32[14,128], index: 6, kind: input, shape index: {}]   ;;  %s1523_s7 = inlined_call_operand.vmem [shape: f32[2,14,224], index: 7, kind: output, shape index: {}]  }
   0x1 LB: > { %s986_s25 = sadd.s32 4294967295, %s1032_s24   ;;  %p990_p0 = scmp.ge.s32.totalorder %s1032_s24, 1  ;;  %s1032_s24 = sphi %s1075_s24, %s17_s24  }
   0x2   : > { %p237_p1 = scmp.lt.s32.totalorder %s1032_s24, 3 }
   0x4   : > { %p238_p2 = pnand %p990_p0, %p237_p1 }
   0x5   : > { %p269_p3 = scmp.lt.s32.totalorder (!%p238_p2), %s986_s25, 1 }
   0x6   : > { %241 = sbr.rel (%p238_p2) target bundleno = 893 (0x37d), region = 48 }
   0xb   : > { %v318_v0 = vld [vmem:[%s1519_s3 + $0xf8] sm:$0xff]  ;;  %v317_v1 = vld [vmem:[%s1519_s3 + $0xf0] sm:$0xff]  ;;  %v316_v2 = vld [vmem:[%s1519_s3 + $0xe8] sm:$0xff]  ;;  %s1525_s25 = smov (!%p269_p3, %s986_s25), 1  ;;  %vm343_vm0 = vcmask 785408   ;;  %v1034_v60 = vmov 0.0  }
   0xc   : > { %350 = vmatprep.subr.mxu0 %v318_v0  ;;  %v315_v3 = vld [vmem:[%s1519_s3 + $0xe0] sm:$0xff]  ;;  %v314_v4 = vld [vmem:[%s1519_s3 + $0xd8] sm:$0xff]  ;;  %v313_v5 = vld [vmem:[%s1519_s3 + $0xd0] sm:$0xff]  ;;  %s1015_s12 = sshll.u32 %s1525_s25, 5  ;;  %691 = vmatprep.mubr.f32.mxu1 %v1034_v60  ;;  %vm434_vm1 = vcmask 1045504   ;;  %vm427_vm2 = vcmask 113664  }
   0xd   : > { %351 = vmatpush1.msra.mxu0 %v317_v1  ;;  %v312_v6 = vld [vmem:[%s1519_s3 + $0xc8] sm:$0xff]  ;;  %v311_v7 = vld [vmem:[%s1519_s3 + $0xc0] sm:$0xff]  ;;  %v310_v8 = vld [vmem:[%s1519_s3 + $0xb8] sm:$0xff]  ;;  %s1145_s21 = scalar_lea.vmem %s1516_s0, %s1015_s12  ;;  %s278_s29 = scalar_lea.vmem %s1523_s7, %s1015_s12  ;;  %vm929_vm3 = vcmask 783360  }
   0xe   : > { %352 = vmatprep.subr.mxu0 %v316_v2  ;;  %v309_v9 = vld [vmem:[%s1519_s3 + $0xb0] sm:$0xff]  ;;  %v308_v10 = vld [vmem:[%s1519_s3 + $0xa8] sm:$0xff]  ;;  %v307_v11 = vld [vmem:[%s1519_s3 + $0xa0] sm:$0xff] }
   0xf   : > { %353 = vmatpush1.msra.mxu0 %v315_v3  ;;  %v306_v12 = vld [vmem:[%s1519_s3 + $0x98] sm:$0xff]  ;;  %v305_v13 = vld [vmem:[%s1519_s3 + $0x90] sm:$0xff]  ;;  %v304_v14 = vld [vmem:[%s1519_s3 + $0x88] sm:$0xff] }
  0x10   : > { %354 = vmatprep.subr.mxu0 %v314_v4  ;;  %v303_v15 = vld [vmem:[%s1519_s3 + $0x80] sm:$0xff]  ;;  %v302_v16 = vld [vmem:[%s1519_s3 + $0x78] sm:$0xff]  ;;  %v301_v17 = vld [vmem:[%s1519_s3 + $0x70] sm:$0xff] }
  0x11   : > { %355 = vmatpush1.msra.mxu0 %v313_v5  ;;  %v300_v18 = vld [vmem:[%s1519_s3 + $0x68] sm:$0xff]  ;;  %v299_v19 = vld [vmem:[%s1519_s3 + $0x60] sm:$0xff]  ;;  %v298_v20 = vld [vmem:[%s1519_s3 + $0x58] sm:$0xff] }
  0x12   : > { %356 = vmatprep.subr.mxu0 %v312_v6  ;;  %v280_v21 = vld [vmem:[%s1145_s21 + $0x8] sm:$0xff]  ;;  %v297_v22 = vld [vmem:[%s1519_s3 + $0x50] sm:$0xff]  ;;  %v295_v24 = vld [vmem:[%s1519_s3 + $0x40] sm:$0xff] }
  0x13   : > { %357 = vmatpush1.msra.mxu0 %v311_v7  ;;  %995 = vmatprep.mubr.msk.f32.mxu0 %vm343_vm0, %v280_v21  ;;  %v296_v23 = vld [vmem:[%s1519_s3 + $0x48] sm:$0xff]  ;;  %v294_v25 = vld [vmem:[%s1519_s3 + $0x38] sm:$0xff]  ;;  %v293_v26 = vld [vmem:[%s1519_s3 + $0x30] sm:$0xff] }
  0x14   : > { %358 = vmatprep.subr.mxu0 %v310_v8  ;;  %v292_v27 = vld [vmem:[%s1519_s3 + $0x28] sm:$0xff]  ;;  %v291_v28 = vld [vmem:[%s1519_s3 + $0x20] sm:$0xff]  ;;  %v290_v29 = vld [vmem:[%s1519_s3 + $0x18] sm:$0xff] }
  0x15   : > { %359 = vmatpush1.msra.mxu0 %v309_v9  ;;  %v289_v30 = vld [vmem:[%s1519_s3 + $0x10] sm:$0xff]  ;;  %v288_v31 = vld [vmem:[%s1519_s3 + $0x8] sm:$0xff]  ;;  %v287_v32 = vld [vmem:[%s1519_s3] sm:$0xff] }
  0x16   : > { %360 = vmatprep.subr.mxu0 %v308_v10  ;;  %v342_v33 = vld [vmem:[%s1519_s3 + $0x1b8] sm:$0xff]  ;;  %v341_v34 = vld [vmem:[%s1519_s3 + $0x1b0] sm:$0xff]  ;;  %v340_v35 = vld [vmem:[%s1519_s3 + $0x1a8] sm:$0xff] }
  0x17   : > { %361 = vmatpush1.msra.mxu0 %v307_v11  ;;  %v339_v36 = vld [vmem:[%s1519_s3 + $0x1a0] sm:$0xff]  ;;  %v338_v37 = vld [vmem:[%s1519_s3 + $0x198] sm:$0xff]  ;;  %v337_v38 = vld [vmem:[%s1519_s3 + $0x190] sm:$0xff] }
  0x18   : > { %362 = vmatprep.subr.mxu0 %v306_v12  ;;  %v336_v39 = vld [vmem:[%s1519_s3 + $0x188] sm:$0xff]  ;;  %v335_v40 = vld [vmem:[%s1519_s3 + $0x180] sm:$0xff]  ;;  %v334_v41 = vld [vmem:[%s1519_s3 + $0x178] sm:$0xff] }
  0x19   : > { %363 = vmatpush1.msra.mxu0 %v305_v13  ;;  %v333_v42 = vld [vmem:[%s1519_s3 + $0x170] sm:$0xff]  ;;  %v332_v43 = vld [vmem:[%s1519_s3 + $0x168] sm:$0xff]  ;;  %v331_v44 = vld [vmem:[%s1519_s3 + $0x160] sm:$0xff] }
  0x1a   : > { %364 = vmatprep.subr.mxu0 %v304_v14  ;;  %v330_v45 = vld [vmem:[%s1519_s3 + $0x158] sm:$0xff]  ;;  %v329_v46 = vld [vmem:[%s1519_s3 + $0x150] sm:$0xff]  ;;  %v328_v47 = vld [vmem:[%s1519_s3 + $0x148] sm:$0xff] }
  0x1b   : > { %365 = vmatpush1.msra.mxu0 %v303_v15  ;;  %v327_v48 = vld [vmem:[%s1519_s3 + $0x140] sm:$0xff]  ;;  %v326_v49 = vld [vmem:[%s1519_s3 + $0x138] sm:$0xff]  ;;  %v325_v50 = vld [vmem:[%s1519_s3 + $0x130] sm:$0xff] }
  0x1c   : > { %366 = vmatprep.subr.mxu0 %v302_v16  ;;  %v324_v51 = vld [vmem:[%s1519_s3 + $0x128] sm:$0xff]  ;;  %v323_v52 = vld [vmem:[%s1519_s3 + $0x120] sm:$0xff]  ;;  %v322_v53 = vld [vmem:[%s1519_s3 + $0x118] sm:$0xff] }
  0x1d   : > { %367 = vmatpush1.msra.mxu0 %v301_v17  ;;  %v321_v54 = vld [vmem:[%s1519_s3 + $0x110] sm:$0xff]  ;;  %v320_v55 = vld [vmem:[%s1519_s3 + $0x108] sm:$0xff]  ;;  %v319_v56 = vld [vmem:[%s1519_s3 + $0x100] sm:$0xff] }
  0x1e   : > { %368 = vmatprep.subr.mxu0 %v300_v18  ;;  %v279_v57 = vld [vmem:[%s1145_s21] sm:$0xff]  ;;  %v282_v58 = vld [vmem:[%s1145_s21 + $0x18] sm:$0x3f]  ;;  %v281_v59 = vld [vmem:[%s1145_s21 + $0x10] sm:$0x3f] }
  0x1f   : > { %369 = vmatpush1.msra.mxu0 %v299_v19  ;;  %v283_v1 = vld [vmem:[%s1517_s1] sm:$0xff]  ;;  %v284_v2 = vld [vmem:[%s1517_s1 + $0x8] sm:$0x3f] }
  0x20   : > { %370 = vmatprep.subr.mxu0 %v298_v20  ;;  %v285_v3 = vld [vmem:[%s1518_s2] sm:$0xff]  ;;  %v286_v4 = vld [vmem:[%s1518_s2 + $0x8] sm:$0x3f] }
  0x21   : > { %371 = vmatpush1.msra.mxu0 %v297_v22  ;;  %v606_v14 = vld [vmem:[%s1521_s5 + $0x8] sm:$0x3f]  ;;  %v607_v18 = vld [vmem:[%s1522_s6] sm:$0xff] }
  0x22   : > { %372 = vmatprep.subr.mxu0 %v296_v23  ;;  %v608_v15 = vld [vmem:[%s1522_s6 + $0x8] sm:$0x3f]  ;;  %v605_v20 = vld [vmem:[%s1521_s5] sm:$0xff] }
  0x23   : > { %373 = vmatpush1.msra.mxu0 %v295_v24 }
  0x24   : > { %374 = vmatprep.subr.mxu0 %v294_v25 }
  0x25   : > { %375 = vmatpush1.msra.mxu0 %v293_v26 }
  0x26   : > { %376 = vmatprep.subr.mxu0 %v292_v27 }
  0x27   : > { %377 = vmatpush1.msra.mxu0 %v291_v28 }
  0x28   : > { %378 = vmatprep.subr.mxu0 %v290_v29 }
  0x29   : > { %379 = vmatpush1.msra.mxu0 %v289_v30 }
  0x2a   : > { %380 = vmatprep.subr.mxu0 %v288_v31 }
  0x2b   : > { %381 = vmatpush1.msra.mxu0 %v287_v32 }
  0x2c   : > { %390 = vmatprep.subr.mxu0 %v342_v33  ;;  %v816_v33 = vld [vmem:[%s1520_s4 + $0xf8] sm:$0xff] }
  0x2d   : > { %391 = vmatpush2.msra.mxu0 %v341_v34  ;;  %v815_v34 = vld [vmem:[%s1520_s4 + $0xf0] sm:$0xff] }
  0x2e   : > { %392 = vmatprep.subr.mxu0 %v340_v35  ;;  %v814_v35 = vld [vmem:[%s1520_s4 + $0xe8] sm:$0xff] }
  0x2f   : > { %393 = vmatpush2.msra.mxu0 %v339_v36  ;;  %v813_v36 = vld [vmem:[%s1520_s4 + $0xe0] sm:$0xff] }
  0x30   : > { %394 = vmatprep.subr.mxu0 %v338_v37  ;;  %v812_v37 = vld [vmem:[%s1520_s4 + $0xd8] sm:$0xff] }
  0x31   : > { %395 = vmatpush2.msra.mxu0 %v337_v38  ;;  %v811_v38 = vld [vmem:[%s1520_s4 + $0xd0] sm:$0xff] }
  0x32   : > { %396 = vmatprep.subr.mxu0 %v336_v39  ;;  %v810_v39 = vld [vmem:[%s1520_s4 + $0xc8] sm:$0xff] }
  0x33   : > { %397 = vmatpush2.msra.mxu0 %v335_v40  ;;  %v809_v40 = vld [vmem:[%s1520_s4 + $0xc0] sm:$0xff] }
  0x34   : > { %398 = vmatprep.subr.mxu0 %v334_v41  ;;  %v808_v41 = vld [vmem:[%s1520_s4 + $0xb8] sm:$0xff] }
  0x35   : > { %399 = vmatpush2.msra.mxu0 %v333_v42  ;;  %v807_v42 = vld [vmem:[%s1520_s4 + $0xb0] sm:$0xff] }
  0x36   : > { %400 = vmatprep.subr.mxu0 %v332_v43  ;;  %v806_v43 = vld [vmem:[%s1520_s4 + $0xa8] sm:$0xff] }
  0x37   : > { %401 = vmatpush2.msra.mxu0 %v331_v44  ;;  %v805_v44 = vld [vmem:[%s1520_s4 + $0xa0] sm:$0xff] }
  0x38   : > { %402 = vmatprep.subr.mxu0 %v330_v45  ;;  %v804_v45 = vld [vmem:[%s1520_s4 + $0x98] sm:$0xff] }
  0x39   : > { %403 = vmatpush2.msra.mxu0 %v329_v46  ;;  %v803_v46 = vld [vmem:[%s1520_s4 + $0x90] sm:$0xff] }
  0x3a   : > { %404 = vmatprep.subr.mxu0 %v328_v47  ;;  %v802_v47 = vld [vmem:[%s1520_s4 + $0x88] sm:$0xff] }
  0x3b   : > { %405 = vmatpush2.msra.mxu0 %v327_v48  ;;  %v801_v48 = vld [vmem:[%s1520_s4 + $0x80] sm:$0xff] }
  0x3c   : > { %406 = vmatprep.subr.mxu0 %v326_v49  ;;  %v800_v49 = vld [vmem:[%s1520_s4 + $0x78] sm:$0xff] }
  0x3d   : > { %407 = vmatpush2.msra.mxu0 %v325_v50  ;;  %v799_v50 = vld [vmem:[%s1520_s4 + $0x70] sm:$0xff] }
  0x3e   : > { %408 = vmatprep.subr.mxu0 %v324_v51  ;;  %v798_v51 = vld [vmem:[%s1520_s4 + $0x68] sm:$0xff] }
  0x3f   : > { %409 = vmatpush2.msra.mxu0 %v323_v52  ;;  %v797_v52 = vld [vmem:[%s1520_s4 + $0x60] sm:$0xff] }
  0x40   : > { %410 = vmatprep.subr.mxu0 %v322_v53  ;;  %v796_v53 = vld [vmem:[%s1520_s4 + $0x58] sm:$0xff] }
  0x41   : > { %411 = vmatpush2.msra.mxu0 %v321_v54  ;;  %v795_v54 = vld [vmem:[%s1520_s4 + $0x50] sm:$0xff] }
  0x42   : > { %412 = vmatprep.subr.mxu0 %v320_v55  ;;  %v794_v55 = vld [vmem:[%s1520_s4 + $0x48] sm:$0xff] }
  0x43   : > { %413 = vmatpush2.msra.mxu0 %v319_v56  ;;  %v793_v56 = vld [vmem:[%s1520_s4 + $0x40] sm:$0xff] }
  0x44   : > { %415 = vmatmul.mubr.f32.vlgmr.msra.gmra.mxu0 %v279_v57  ;;  %v792_v57 = vld [vmem:[%s1520_s4 + $0x38] sm:$0xff] }
  0x45   : > { %996 = vmatprep.mubr.msk.f32.mxu0 %vm343_vm0, %v282_v58  ;;  %v791_v58 = vld [vmem:[%s1520_s4 + $0x30] sm:$0xff] }
  0x48   : > { %421 = vmatmul.mubr.f32.gmra.mxu0 %v281_v59  ;;  %v790_v59 = vld [vmem:[%s1520_s4 + $0x28] sm:$0xff] }
  0x49   : > { %505 = vmatprep.mubr.f32.mxu0 %v1034_v60 }
 0x104   : > { %v416_v61 = vpop.f32.mrf.mxu0 }
 0x106   : > { %v418_v62 = vpop.f32.mrf.mxu0 }
 0x108   : > { %v422_v63 = vpop.f32.mrf.mxu0 }
 0x10a   : > { %v424_v0 = vpop.f32.mrf.mxu0 }
 0x10b   : > { %997 = vmatprep.subr.msk.mxu0 %vm434_vm1, %v424_v0 }
 0x10c   : > { %998 = vmatpush1.msk.msra.mxu0 %vm434_vm1, %v422_v63 }
 0x10d   : > { %471 = vmatprep.subr.mxu0 %v418_v62 }
 0x10e   : > { %472 = vmatpush1.msra.mxu0 %v416_v61 }
 0x10f   : > { %999 = vmatmul.mubr.msk.f32.vlgmr.msra.gmra.mxu0 %vm427_vm2, %v283_v1  ;;  %1001 = vmatprep.subr.msk.mxu0 %vm434_vm1, %v424_v0  ;;  %v785_v0 = vld [vmem:[%s1520_s4] sm:$0xff] }
 0x110   : > { %1002 = vmatpush1.msk.msra.mxu0 %vm434_vm1, %v422_v63  ;;  %511 = vmatprep.mubr.f32.mxu0 %v1034_v60  ;;  %v786_v63 = vld [vmem:[%s1520_s4 + $0x8] sm:$0xff] }
 0x111   : > { %554 = vmatprep.subr.mxu0 %v418_v62  ;;  %v787_v62 = vld [vmem:[%s1520_s4 + $0x10] sm:$0xff] }
 0x112   : > { %555 = vmatpush1.msra.mxu0 %v416_v61  ;;  %v788_v61 = vld [vmem:[%s1520_s4 + $0x18] sm:$0xff] }
 0x113   : > { %1000 = vmatmul.mubr.msk.f32.gmra.mxu0 %vm427_vm2, %v284_v2 }
 0x114   : > { %588 = vmatprep.mubr.f32.mxu0 %v1034_v60 }
 0x117   : > { %1003 = vmatmul.mubr.msk.f32.vlgmr.msra.gmra.mxu0 %vm427_vm2, %v285_v3 }
 0x118   : > { %594 = vmatprep.mubr.f32.mxu0 %v1034_v60 }
 0x11b   : > { %1004 = vmatmul.mubr.msk.f32.gmra.mxu0 %vm427_vm2, %v286_v4 }
 0x1cf   : > { %v507_v5 = vpop.f32.mrf.mxu0 }
 0x1d1   : > { %v509_v6 = vpop.f32.mrf.mxu0 }
 0x1d3   : > { %v513_v7 = vpop.f32.mrf.mxu0 }
 0x1d5   : > { %v515_v8 = vpop.f32.mrf.mxu0 }
 0x1d7   : > { %v590_v9 = vpop.f32.mrf.mxu0 }
 0x1d8   : > { %v603_v17 = vsub.f32 %v509_v6, %v590_v9  ;;  %v843_v6 = vld [vmem:[%s1520_s4 + $0x1d0] sm:$0xff]  ;;  %v840_v9 = vld [vmem:[%s1520_s4 + $0x1b8] sm:$0xff] }
 0x1d9   : > { %v592_v10 = vpop.f32.mrf.mxu0 }
 0x1da   : > { %v601_v11 = vadd.f32 %v592_v10, %v507_v5  ;;  %v617_v27 = vmul.f32 %v605_v20, %v603_v17  ;;  %v611_v30 = vmul.f32 %v607_v18, %v603_v17  ;;  %v844_v5 = vld [vmem:[%s1520_s4 + $0x1d8] sm:$0xff]  ;;  %v839_v10 = vld [vmem:[%s1520_s4 + $0x1b0] sm:$0xff] }
 0x1db   : > { %v596_v12 = vpop.f32.mrf.mxu0  ;;  %v832_v17 = vld [vmem:[%s1520_s4 + $0x178] sm:$0xff] }
 0x1dc   : > { %v604_v13 = vsub.f32 %v515_v8, %v596_v12  ;;  %v615_v21 = vmul.f32 %v607_v18, %v601_v11  ;;  %v609_v26 = vmul.f32 %v605_v20, %v601_v11  ;;  %v841_v8 = vld [vmem:[%s1520_s4 + $0x1c0] sm:$0xff]  ;;  %v838_v11 = vld [vmem:[%s1520_s4 + $0x1a8] sm:$0xff]  ;;  %v831_v18 = vld [vmem:[%s1520_s4 + $0x170] sm:$0xff] }
 0x1dd   : > { %v598_v16 = vpop.f32.mrf.mxu0  ;;  %v837_v12 = vld [vmem:[%s1520_s4 + $0x1a0] sm:$0xff] }
 0x1de   : > { %v602_v19 = vadd.f32 %v598_v16, %v513_v7  ;;  %v612_v22 = vmul.f32 %v608_v15, %v604_v13  ;;  %v618_v23 = vmul.f32 %v606_v14, %v604_v13  ;;  %v619_v31 = vadd.f32 %v617_v27, %v615_v21  ;;  %v842_v7 = vld [vmem:[%s1520_s4 + $0x1c8] sm:$0xff]  ;;  %v836_v13 = vld [vmem:[%s1520_s4 + $0x198] sm:$0xff]  ;;  %v833_v16 = vld [vmem:[%s1520_s4 + $0x180] sm:$0xff] }
 0x1df   : > { %v613_v32 = vsub.f32 %v609_v26, %v611_v30  ;;  %v829_v20 = vld [vmem:[%s1520_s4 + $0x160] sm:$0xff]  ;;  %v828_v21 = vld [vmem:[%s1520_s4 + $0x158] sm:$0xff]  ;;  %v823_v26 = vld [vmem:[%s1520_s4 + $0x130] sm:$0xff] }
 0x1e0   : > { %v610_v24 = vmul.f32 %v606_v14, %v602_v19  ;;  %v616_v25 = vmul.f32 %v608_v15, %v602_v19  ;;  %v835_v14 = vld [vmem:[%s1520_s4 + $0x190] sm:$0xff]  ;;  %v834_v15 = vld [vmem:[%s1520_s4 + $0x188] sm:$0xff] }
 0x1e1   : > { %v830_v19 = vld [vmem:[%s1520_s4 + $0x168] sm:$0xff]  ;;  %v819_v30 = vld [vmem:[%s1520_s4 + $0x110] sm:$0xff] }
 0x1e2   : > { %v620_v28 = vadd.f32 %v618_v23, %v616_v25  ;;  %v614_v29 = vsub.f32 %v610_v24, %v612_v22  ;;  %v827_v22 = vld [vmem:[%s1520_s4 + $0x150] sm:$0xff]  ;;  %v826_v23 = vld [vmem:[%s1520_s4 + $0x148] sm:$0xff]  ;;  %v825_v24 = vld [vmem:[%s1520_s4 + $0x140] sm:$0xff] }
 0x1e3   : > { %v824_v25 = vld [vmem:[%s1520_s4 + $0x138] sm:$0xff]  ;;  %v822_v27 = vld [vmem:[%s1520_s4 + $0x128] sm:$0xff] }
 0x1e4   : > { %1005 = vmatprep.subr.msk.mxu1 %vm434_vm1, %v620_v28 }
 0x1e5   : > { %1006 = vmatpush1.msk.msra.mxu1 %vm434_vm1, %v614_v29 }
 0x1e6   : > { %657 = vmatprep.subr.mxu1 %v619_v31 }
 0x1e7   : > { %658 = vmatpush1.msra.mxu1 %v613_v32 }
 0x1e8   : > { %1007 = vmatmul.mubr.msk.f32.vlgmr.msra.gmra.mxu1 %vm427_vm2, %v283_v1  ;;  %1009 = vmatprep.subr.msk.mxu1 %vm434_vm1, %v620_v28  ;;  %v848_v1 = vld [vmem:[%s1520_s4 + $0x1f8] sm:$0xff]  ;;  %v821_v28 = vld [vmem:[%s1520_s4 + $0x120] sm:$0xff] }
 0x1e9   : > { %1010 = vmatpush1.msk.msra.mxu1 %vm434_vm1, %v614_v29  ;;  %697 = vmatprep.mubr.f32.mxu1 %v1034_v60  ;;  %v820_v29 = vld [vmem:[%s1520_s4 + $0x118] sm:$0xff] }
 0x1ea   : > { %734 = vmatprep.subr.mxu1 %v619_v31  ;;  %v818_v31 = vld [vmem:[%s1520_s4 + $0x108] sm:$0xff] }
 0x1eb   : > { %735 = vmatpush1.msra.mxu1 %v613_v32  ;;  %v817_v32 = vld [vmem:[%s1520_s4 + $0x100] sm:$0xff] }
 0x1ec   : > { %1008 = vmatmul.mubr.msk.f32.gmra.mxu1 %vm427_vm2, %v284_v2  ;;  %849 = vmatprep.subr.mxu1 %v816_v33  ;;  %v847_v2 = vld [vmem:[%s1520_s4 + $0x1f0] sm:$0xff] }
 0x1ed   : > { %768 = vmatprep.mubr.f32.mxu1 %v1034_v60 }
 0x1f0   : > { %1011 = vmatmul.mubr.msk.f32.vlgmr.msra.gmra.mxu1 %vm427_vm2, %v285_v3  ;;  %v846_v3 = vld [vmem:[%s1520_s4 + $0x1e8] sm:$0xff] }
 0x1f1   : > { %774 = vmatprep.mubr.f32.mxu1 %v1034_v60  ;;  %850 = vmatpush1.msra.mxu1 %v815_v34  ;;  %v789_v60 = vld [vmem:[%s1520_s4 + $0x20] sm:$0xff] }
 0x1f2   : > { %851 = vmatprep.subr.mxu1 %v814_v35 }
 0x1f3   : > { %852 = vmatpush1.msra.mxu1 %v813_v36 }
 0x1f4   : > { %1012 = vmatmul.mubr.msk.f32.gmra.mxu1 %vm427_vm2, %v286_v4  ;;  %853 = vmatprep.subr.mxu1 %v812_v37  ;;  %v845_v4 = vld [vmem:[%s1520_s4 + $0x1e0] sm:$0xff] }
 0x1f5   : > { %854 = vmatpush1.msra.mxu1 %v811_v38 }
 0x1f6   : > { %855 = vmatprep.subr.mxu1 %v810_v39 }
 0x1f7   : > { %856 = vmatpush1.msra.mxu1 %v809_v40 }
 0x1f8   : > { %857 = vmatprep.subr.mxu1 %v808_v41 }
 0x1f9   : > { %858 = vmatpush1.msra.mxu1 %v807_v42 }
 0x1fa   : > { %859 = vmatprep.subr.mxu1 %v806_v43 }
 0x1fb   : > { %860 = vmatpush1.msra.mxu1 %v805_v44 }
 0x1fc   : > { %861 = vmatprep.subr.mxu1 %v804_v45 }
 0x1fd   : > { %862 = vmatpush1.msra.mxu1 %v803_v46 }
 0x1fe   : > { %863 = vmatprep.subr.mxu1 %v802_v47 }
 0x1ff   : > { %864 = vmatpush1.msra.mxu1 %v801_v48 }
 0x200   : > { %865 = vmatprep.subr.mxu1 %v800_v49 }
 0x201   : > { %866 = vmatpush1.msra.mxu1 %v799_v50 }
 0x202   : > { %867 = vmatprep.subr.mxu1 %v798_v51 }
 0x203   : > { %868 = vmatpush1.msra.mxu1 %v797_v52 }
 0x204   : > { %869 = vmatprep.subr.mxu1 %v796_v53 }
 0x205   : > { %870 = vmatpush1.msra.mxu1 %v795_v54 }
 0x206   : > { %871 = vmatprep.subr.mxu1 %v794_v55 }
 0x207   : > { %872 = vmatpush1.msra.mxu1 %v793_v56 }
 0x208   : > { %873 = vmatprep.subr.mxu1 %v792_v57 }
 0x209   : > { %874 = vmatpush1.msra.mxu1 %v791_v58 }
 0x20a   : > { %875 = vmatprep.subr.mxu1 %v790_v59 }
 0x20b   : > { %876 = vmatpush1.msra.mxu1 %v789_v60 }
 0x20c   : > { %877 = vmatprep.subr.mxu1 %v788_v61 }
 0x20d   : > { %878 = vmatpush1.msra.mxu1 %v787_v62 }
 0x20e   : > { %879 = vmatprep.subr.mxu1 %v786_v63 }
 0x20f   : > { %880 = vmatpush1.msra.mxu1 %v785_v0 }
 0x210   : > { %881 = vmatprep.subr.mxu1 %v848_v1 }
 0x211   : > { %882 = vmatpush2.msra.mxu1 %v847_v2 }
 0x212   : > { %883 = vmatprep.subr.mxu1 %v846_v3 }
 0x213   : > { %884 = vmatpush2.msra.mxu1 %v845_v4 }
 0x214   : > { %885 = vmatprep.subr.mxu1 %v844_v5 }
 0x215   : > { %886 = vmatpush2.msra.mxu1 %v843_v6 }
 0x216   : > { %887 = vmatprep.subr.mxu1 %v842_v7 }
 0x217   : > { %888 = vmatpush2.msra.mxu1 %v841_v8 }
 0x218   : > { %889 = vmatprep.subr.mxu1 %v840_v9 }
 0x219   : > { %890 = vmatpush2.msra.mxu1 %v839_v10 }
 0x21a   : > { %891 = vmatprep.subr.mxu1 %v838_v11 }
 0x21b   : > { %892 = vmatpush2.msra.mxu1 %v837_v12 }
 0x21c   : > { %893 = vmatprep.subr.mxu1 %v836_v13 }
 0x21d   : > { %894 = vmatpush2.msra.mxu1 %v835_v14 }
 0x21e   : > { %895 = vmatprep.subr.mxu1 %v834_v15 }
 0x21f   : > { %896 = vmatpush2.msra.mxu1 %v833_v16 }
 0x220   : > { %897 = vmatprep.subr.mxu1 %v832_v17 }
 0x221   : > { %898 = vmatpush2.msra.mxu1 %v831_v18 }
 0x222   : > { %899 = vmatprep.subr.mxu1 %v830_v19 }
 0x223   : > { %900 = vmatpush2.msra.mxu1 %v829_v20 }
 0x224   : > { %901 = vmatprep.subr.mxu1 %v828_v21 }
 0x225   : > { %902 = vmatpush2.msra.mxu1 %v827_v22 }
 0x226   : > { %903 = vmatprep.subr.mxu1 %v826_v23 }
 0x227   : > { %904 = vmatpush2.msra.mxu1 %v825_v24 }
 0x228   : > { %905 = vmatprep.subr.mxu1 %v824_v25 }
 0x229   : > { %906 = vmatpush2.msra.mxu1 %v823_v26 }
 0x22a   : > { %907 = vmatprep.subr.mxu1 %v822_v27 }
 0x22b   : > { %908 = vmatpush2.msra.mxu1 %v821_v28 }
 0x22c   : > { %909 = vmatprep.subr.mxu1 %v820_v29 }
 0x22d   : > { %910 = vmatpush2.msra.mxu1 %v819_v30 }
 0x22e   : > { %911 = vmatprep.subr.mxu1 %v818_v31 }
 0x22f   : > { %912 = vmatpush2.msra.mxu1 %v817_v32 }
 0x2a8   : > { %v693_v33 = vpop.f32.mrf.mxu1 }
 0x2aa   : > { %v695_v34 = vpop.f32.mrf.mxu1 }
 0x2ac   : > { %v699_v35 = vpop.f32.mrf.mxu1 }
 0x2ae   : > { %v701_v36 = vpop.f32.mrf.mxu1 }
 0x2b0   : > { %v770_v37 = vpop.f32.mrf.mxu1 }
 0x2b1   : > { %v783_v38 = vadd.f32 %v770_v37, %v695_v34 }
 0x2b2   : > { %v772_v39 = vpop.f32.mrf.mxu1 }
 0x2b3   : > { %v781_v40 = vsub.f32 %v693_v33, %v772_v39  ;;  %913 = vmatprep.mubr.f32.mxu1 %v783_v38 }
 0x2b4   : > { %v776_v41 = vpop.f32.mrf.mxu1 }
 0x2b5   : > { %v784_v42 = vadd.f32 %v776_v41, %v701_v36  ;;  %914 = vmatmul.mubr.f32.vlgmr.msra.gmra.mxu1 %v781_v40 }
 0x2b6   : > { %v778_v43 = vpop.f32.mrf.mxu1 }
 0x2b7   : > { %v782_v44 = vsub.f32 %v699_v35, %v778_v43  ;;  %919 = vmatprep.mubr.f32.mxu1 %v784_v42 }
 0x2b9   : > { %920 = vmatmul.mubr.f32.gmra.mxu1 %v782_v44 }
 0x375   : > { %v915_v45 = vpop.f32.mrf.mxu1 }
 0x376   : > { %926 = vst [vmem:[%s278_s29] sm:$0xff] %v915_v45 }
 0x377   : > { %v917_v46 = vpop.f32.mrf.mxu1 }
 0x378   : > { %927 = vst.msk [vmem:[%s278_s29 + $0x8] sm:$0xff] %vm343_vm0, %v917_v46 }
 0x379   : > { %v921_v47 = vpop.f32.mrf.mxu1 }
 0x37a   : > { %928 = vst [vmem:[%s278_s29 + $0x10] sm:$0x3f] %v921_v47 }
 0x37b   : > { %v923_v48 = vpop.f32.mrf.mxu1 }
 0x37c   : > { %930 = vst.msk [vmem:[%s278_s29 + $0x18] sm:$0x3f] %vm929_vm3, %v923_v48 }
 0x37d PF: > { %s17_s24 = sadd.s32 1, %s1032_s24  }
 0x37e   : > { %p14_p4 = scmp.ge.s32.totalorder %s17_s24, 4  }
 0x380   :  { %16 = sbr.rel (!%p14_p4) target bundleno = 1 (0x1), region = 78 }

</bundles_post_ra>
